<compile_context>
chip_gen: v5e
topology: v5e:2x2
jax: 0.10.0
libtpu: 0.0.40
codegen_flags: <defaults>
</compile_context>

<pallas_src>
import functools

import jax
import jax.numpy as jnp
from jax.experimental import pallas as pl
from jax.experimental.pallas import tpu as pltpu


class ConstantSchedule:
    """Mirror of vel's ConstantSchedule: value(progress) == constant."""

    def __init__(self, value):
        self._value = float(value)

    def value(self, progress):
        return self._value


_LANES = 128            # lane-dense last dim
_MAX_BLOCK_ROWS = 2048  # (2048, 128) int32 tile = 1 MiB; safe on v7x 64 MiB VMEM


def _hash_u32(x):
    """lowbias32 integer hash: good 32-bit mixer, pure VPU int ops."""
    x = x ^ (x >> 16)
    x = x * jnp.uint32(0x7FEB352D)
    x = x ^ (x >> 15)
    x = x * jnp.uint32(0x846CA68B)
    x = x ^ (x >> 16)
    return x


def _eps_greedy_kernel(seed_ref, thr_ref, actions_ref, out_ref, *,
                       n_actions, block_rows):
    shape = actions_ref.shape  # (block_rows, 128)

    # Global element index (counter for the stateless PRNG) — unique per element
    # across the whole grid, so every block gets an independent stream.
    row0 = pl.program_id(0) * block_rows
    rows = jax.lax.broadcasted_iota(jnp.int32, shape, 0) + row0
    lanes = jax.lax.broadcasted_iota(jnp.int32, shape, 1)
    idx = (rows * _LANES + lanes).astype(jnp.uint32)

    # Single 32-bit random draw per element, keyed by (seed, element index).
    seed_u = seed_ref[0].astype(jnp.uint32) * jnp.uint32(0x9E3779B9)
    bits = _hash_u32(idx + seed_u)

    # Low 16 bits -> torch.randint_like(actions, n): uniform int in [0, n).
    random_samples = (((bits & jnp.uint32(0xFFFF)) * jnp.uint32(n_actions))
                      >> 16).astype(actions_ref.dtype)

    # High 16 bits -> selector, compared against integer threshold
    # (threshold = floor(epsilon * 2^16), so selector > thr  <=>  u16/2^16 > eps).
    selector = (bits >> 16).astype(jnp.int32)

    out_ref[...] = jnp.where(selector > thr_ref[0],
                             actions_ref[...], random_samples)


def eps_greedy_forward(actions, *, epsilon_schedule, n_actions, seed=0,
                       batch_info=None):
    """Pallas-backed equivalent of EpsGreedy.forward.

    NOTE: pass a fresh non-negative `seed` each step (torch's global RNG
    advances automatically; here determinism is explicit via `seed`).
    """
    if batch_info is None:
        epsilon = epsilon_schedule.value(1.0)
    else:
        epsilon = epsilon_schedule.value(batch_info["progress"])

    orig_shape = actions.shape
    flat = actions.reshape(-1)
    n = flat.shape[0]

    # Pad to a lane-dense (rows, 128) slab.
    pad = (-n) % _LANES
    if pad:
        flat = jnp.concatenate([flat, jnp.zeros((pad,), flat.dtype)])
    rows = flat.shape[0] // _LANES

    # Tile choice: whole array as a single block for small inputs, otherwise
    # (2048, 128) tiles pipelined over a 1-D "parallel" grid.
    if rows <= _MAX_BLOCK_ROWS:
        block_rows = rows
    else:
        block_rows = _MAX_BLOCK_ROWS
        row_pad = (-rows) % block_rows
        if row_pad:
            flat = jnp.concatenate(
                [flat, jnp.zeros((row_pad * _LANES,), flat.dtype)])
            rows += row_pad

    actions_2d = flat.reshape(rows, _LANES)
    grid = (rows // block_rows,)

    seed_arr = jnp.asarray([seed], dtype=jnp.int32)
    thr_arr = jnp.asarray([int(float(epsilon) * 65536.0)], dtype=jnp.int32)

    out_2d = pl.pallas_call(
        functools.partial(_eps_greedy_kernel, n_actions=n_actions,
                          block_rows=block_rows),
        out_shape=jax.ShapeDtypeStruct(actions_2d.shape, actions_2d.dtype),
        grid=grid,
        in_specs=[
            pl.BlockSpec(memory_space=pltpu.MemorySpace.SMEM),   # seed scalar
            pl.BlockSpec(memory_space=pltpu.MemorySpace.SMEM),   # eps threshold
            pl.BlockSpec((block_rows, _LANES), lambda i: (i, 0)),
        ],
        out_specs=pl.BlockSpec((block_rows, _LANES), lambda i: (i, 0)),
        compiler_params=pltpu.CompilerParams(
            dimension_semantics=("parallel",)),
    )(seed_arr, thr_arr, actions_2d)

    return out_2d.reshape(-1)[:n].reshape(orig_shape)


# TODO(synk): for tiny per-step batches (a few hundred envs) the standalone
# pallas_call is launch-overhead dominated; fusing into the surrounding policy
# computation (or plain jnp) would be faster end-to-end.

if __name__ == "__main__":
    key = jax.random.PRNGKey(0)

    n_actions = 6          # environment.action_space.n
    epsilon = 0.1
    num_envs = 256         # small batch of per-env greedy actions

    actions = jax.random.randint(key, (num_envs,), 0, n_actions, dtype=jnp.int32)

    schedule = ConstantSchedule(epsilon)
    noisy = eps_greedy_forward(
        actions, epsilon_schedule=schedule, n_actions=n_actions, seed=1234
    )
    noisy = jax.block_until_ready(noisy)

    # Sanity checks: shape/dtype preserved, every output is a valid action, and
    # with epsilon=0.1 the vast majority of actions are kept unchanged.
    assert noisy.shape == actions.shape
    assert noisy.dtype == actions.dtype
    assert bool(jnp.all(noisy >= 0)) and bool(jnp.all(noisy < n_actions))
    frac_same = float(jnp.mean((noisy == actions).astype(jnp.float32)))
    assert frac_same > 0.6, f"too many actions resampled: kept {frac_same:.2f}"

    print("KERNEL_OK")
</pallas_src>

<mosaic_0001>
module attributes {stable_mosaic.version = 11 : i64} {
  func.func @_eps_greedy_kernel(%arg0: i32, %arg1: memref<1xi32, #tpu.memory_space<smem>>, %arg2: memref<1xi32, #tpu.memory_space<smem>>, %arg3: memref<2x128xi32, #tpu.memory_space<vmem>>, %arg4: memref<2x128xi32, #tpu.memory_space<vmem>>) attributes {dimension_semantics = [#tpu.dimension_semantics<parallel>], iteration_bounds = array<i64: 1>, scalar_prefetch = 0 : i64, scratch_operands = 0 : i64, tpu.core_type = #tpu.core_type<tc>, window_params = [{transform_indices = @transform_0, window_bounds = array<i64: 1>}, {transform_indices = @transform_1, window_bounds = array<i64: 1>}, {transform_indices = @transform_2, window_bounds = array<i64: 2, 128>}, {transform_indices = @transform_3, window_bounds = array<i64: 2, 128>}]} {
    %c2_i32 = arith.constant 2 : i32
    %0 = arith.muli %arg0, %c2_i32 : i32
    %1 = tpu.iota {dimensions = array<i32: 0>} : vector<2x128xi32>
    %2 = vector.broadcast %0 : i32 to vector<2x128xi32>
    %3 = arith.addi %1, %2 : vector<2x128xi32>
    %4 = tpu.iota {dimensions = array<i32: 1>} : vector<2x128xi32>
    %c128_i32 = arith.constant 128 : i32
    %5 = vector.broadcast %c128_i32 : i32 to vector<2x128xi32>
    %6 = arith.muli %3, %5 : vector<2x128xi32>
    %7 = arith.addi %6, %4 : vector<2x128xi32>
    %c0 = arith.constant 0 : index
    %8 = memref.load %arg1[%c0] : memref<1xi32, #tpu.memory_space<smem>>
    %c-1640531527_i32 = arith.constant -1640531527 : i32
    %9 = arith.muli %8, %c-1640531527_i32 : i32
    %10 = vector.broadcast %9 : i32 to vector<2x128xi32>
    %11 = arith.addi %7, %10 : vector<2x128xi32>
    %c16_i32 = arith.constant 16 : i32
    %12 = vector.broadcast %c16_i32 : i32 to vector<2x128xi32>
    %13 = arith.shrui %11, %12 : vector<2x128xi32>
    %14 = arith.xori %11, %13 : vector<2x128xi32>
    %c2146121005_i32 = arith.constant 2146121005 : i32
    %15 = vector.broadcast %c2146121005_i32 : i32 to vector<2x128xi32>
    %16 = arith.muli %14, %15 : vector<2x128xi32>
    %c15_i32 = arith.constant 15 : i32
    %17 = vector.broadcast %c15_i32 : i32 to vector<2x128xi32>
    %18 = arith.shrui %16, %17 : vector<2x128xi32>
    %19 = arith.xori %16, %18 : vector<2x128xi32>
    %c-2073254261_i32 = arith.constant -2073254261 : i32
    %20 = vector.broadcast %c-2073254261_i32 : i32 to vector<2x128xi32>
    %21 = arith.muli %19, %20 : vector<2x128xi32>
    %c16_i32_0 = arith.constant 16 : i32
    %22 = vector.broadcast %c16_i32_0 : i32 to vector<2x128xi32>
    %23 = arith.shrui %21, %22 : vector<2x128xi32>
    %24 = arith.xori %21, %23 : vector<2x128xi32>
    %c65535_i32 = arith.constant 65535 : i32
    %25 = vector.broadcast %c65535_i32 : i32 to vector<2x128xi32>
    %26 = arith.andi %24, %25 : vector<2x128xi32>
    %c6_i32 = arith.constant 6 : i32
    %27 = vector.broadcast %c6_i32 : i32 to vector<2x128xi32>
    %28 = arith.muli %26, %27 : vector<2x128xi32>
    %c16_i32_1 = arith.constant 16 : i32
    %29 = vector.broadcast %c16_i32_1 : i32 to vector<2x128xi32>
    %30 = arith.shrui %28, %29 : vector<2x128xi32>
    %c16_i32_2 = arith.constant 16 : i32
    %31 = vector.broadcast %c16_i32_2 : i32 to vector<2x128xi32>
    %32 = arith.shrui %24, %31 : vector<2x128xi32>
    %c0_3 = arith.constant 0 : index
    %33 = memref.load %arg2[%c0_3] : memref<1xi32, #tpu.memory_space<smem>>
    %34 = vector.broadcast %33 : i32 to vector<2x128xi32>
    %35 = arith.cmpi sgt, %32, %34 : vector<2x128xi32>
    %c0_4 = arith.constant 0 : index
    %c0_5 = arith.constant 0 : index
    %36 = vector.load %arg3[%c0_4, %c0_5] : memref<2x128xi32, #tpu.memory_space<vmem>>, vector<2x128xi32>
    %37 = arith.select %35, %36, %30 : vector<2x128xi1>, vector<2x128xi32>
    %c0_6 = arith.constant 0 : index
    %c0_7 = arith.constant 0 : index
    %38 = vector.load %arg4[%c0_6, %c0_7] : memref<2x128xi32, #tpu.memory_space<vmem>>, vector<2x128xi32>
    tpu.vector_store %arg4[%c0_6, %c0_7], %37 {strides = array<i32>} : memref<2x128xi32, #tpu.memory_space<vmem>>, vector<2x128xi32>,
    return
  }
  func.func @transform_0(%arg0: i32) -> i32 {
    %c0_i32 = arith.constant 0 : i32
    %c0_i32_0 = arith.constant 0 : i32
    return %c0_i32 : i32
  }
  func.func @transform_1(%arg0: i32) -> i32 {
    %c0_i32 = arith.constant 0 : i32
    %c0_i32_0 = arith.constant 0 : i32
    return %c0_i32 : i32
  }
  func.func @transform_2(%arg0: i32) -> (i32, i32) {
    %c0_i32 = arith.constant 0 : i32
    %c0_i32_0 = arith.constant 0 : i32
    return %arg0, %c0_i32 : i32, i32
  }
  func.func @transform_3(%arg0: i32) -> (i32, i32) {
    %c0_i32 = arith.constant 0 : i32
    %c0_i32_0 = arith.constant 0 : i32
    return %arg0, %c0_i32 : i32, i32
  }
}

</mosaic_0001>

<bundles_post_ra>
// kernel: tpu_custom_call.1
= control target key start
LH: loop header
LB: loop body
LE: loop exit
PB: predicated region body
PF: predicated region fallthrough
CT: control target
= control target key end

     0   :  { %v18_v0 = vlaneseq  ;;  %s124_s0 = inlined_call_operand.<no memory space> [shape: s32[1], index: 0, kind: input, shape index: {}]   ;;  %s125_s1 = inlined_call_operand.<no memory space> [shape: s32[1], index: 1, kind: input, shape index: {}]   ;;  %s126_s2 = inlined_call_operand.vmem [shape: s32[2,128], index: 2, kind: input, shape index: {}]   ;;  %s127_s3 = inlined_call_operand.hbm [shape: s32[2,128], index: 3, kind: output, shape index: {}]  }
   0x1   :  { %10 = vsyncpa [#allocation5], 0  ;;  %s27_s14 = smul.u32 2654435769, %s124_s0  ;;  %v43_v17 = vstv %s125_s1  ;;  %s91_s0 = smov [#allocation4]  }
   0x2   :  { %v19_v1 = vshrl.u32 %v18_v0, 7  ;;  %v23_v2 = vand.u32 127, %v18_v0  ;;  %s53_s17 = sshll.u32 %s91_s0, 4  ;;  %s55_s20 = sshll.u32 %s127_s3, 4  ;;  %v45_v19 = vld [vmem:[%s126_s2] sm:$0x3]  ;;  %s54_s17 = int_to_ptr.vmem [resolvable:$true] %s53_s17  ;;  %s56_s20 = int_to_ptr.hbm [resolvable:$true] %s55_s20 }
   0x3   :  { %v28_v4 = vstv %s27_s14 }
   0x4   :  { %v24_v3 = vmul.u32 128, %v19_v1 }
   0x6   :  { %v25_v5 = vadd.s32 %v24_v3, %v23_v2 }
   0x8   :  { %v29_v6 = vadd.s32 %v28_v4, %v25_v5 }
   0xa   :  { %v30_v7 = vshrl.u32 %v29_v6, 16 }
   0xc   :  { %v31_v8 = vxor.u32 %v30_v7, %v29_v6 }
   0xe   :  { %v32_v9 = vmul.u32 2146121005, %v31_v8 }
  0x10   :  { %v33_v10 = vshrl.u32 %v32_v9, 15 }
  0x12   :  { %v34_v11 = vxor.u32 %v33_v10, %v32_v9 }
  0x14   :  { %v35_v12 = vmul.u32 2221713035, %v34_v11 }
  0x16   :  { %v36_v13 = vshrl.u32 %v35_v12, 16 }
  0x18   :  { %v37_v14 = vxor.u32 %v36_v13, %v35_v12 }
  0x1a   :  { %v38_v15 = vand.u32 65535, %v37_v14  ;;  %v41_v16 = vshrl.u32 %v37_v14, 16 }
  0x1c   :  { %v39_v18 = vmul.u32 6, %v38_v15  ;;  %vm44_vm0 = vcmp.gt.s32.totalorder %v41_v16, %v43_v17 }
  0x1e   :  { %v40_v20 = vshrl.u32 %v39_v18, 16 }
  0x20   :  { %v46_v21 = vsel %vm44_vm0, %v45_v19, %v40_v20 }
  0x21   :  { %47 = vst [vmem:[#allocation4] sm:$0x3] %v46_v21 }
  0x22   :  { %58 = dma.vmem_to_hbm [thread:$0]  %s54_s17, 32, %s56_s20, [#allocation5]  }
  0x23   :  { %89 = dma.done.wait [#allocation5], 32  }
  0x24   :  { %90 = vsyncadd [#allocation5], 4294967264 }
  0x25   :  { %63 = vsyncpa [#allocation5], 1 }

</bundles_post_ra>
